<compile_context>
chip_gen: v7x
topology: tpu7x:2x2x1
jax: 0.10.0
libtpu: 0.0.40
codegen_flags: <defaults>
</compile_context>

<pallas_src>
import functools

import jax
import jax.numpy as jnp
from jax.experimental import pallas as pl
from jax.experimental.pallas import tpu as pltpu


def _round_up(x, m):
    return ((x + m - 1) // m) * m


def _input_processing_kernel(pos_ref, inp_ref, wb_ref, out_ref, *,
                             members, latent_dim, fourier_dim, pos_dim):
    pos_aug = pos_ref[...]          # (tn, D+1) f32, last column is 1.0
    inp = inp_ref[...]              # (tn, M)   f32

    # Fused projection: [latent+bias | proj | proj] = [pos|1] @ [[W|B|B],[bias|0|0]]
    fused = jnp.dot(pos_aug, wb_ref[...],
                    preferred_element_type=jnp.float32)               # (tn, L+2F)

    # In-place sin / cos on the two fourier blocks via a lane-index select:
    # lanes [0,L) latent, [L,L+F) sin(proj), [L+F,L+2F) cos(proj).
    lane = jax.lax.broadcasted_iota(jnp.int32, fused.shape, 1)
    enc = jnp.where(lane < latent_dim, fused,
                    jnp.where(lane < latent_dim + fourier_dim,
                              jnp.sin(fused), jnp.cos(fused)))        # (tn, L+2F)

    odt = out_ref.dtype
    enc = enc.astype(odt)
    pos = pos_aug[:, :pos_dim].astype(odt)                            # (tn, D)
    inp = inp.astype(odt)

    # Assemble the whole flat row [enc | inp_m | pos] * members in registers and
    # emit one lane-dense store (assembly uses idle XLU/VALU slots; stores were
    # the bottleneck). Layout matches torch.cat([latent, fourier, inp, pos], -1).
    pieces = []
    for m in range(members):
        pieces.append(enc)
        pieces.append(inp[:, m:m + 1])
        pieces.append(pos)
    out_ref[...] = jnp.concatenate(pieces, axis=-1)


@functools.partial(jax.jit, static_argnames=("tile_n", "out_dtype"))
def input_processing(inputs, pos, b_mat, w_mat, bias, *, tile_n=1024,
                     out_dtype=jnp.float32):
    N, M = inputs.shape
    D = pos.shape[-1]
    F = b_mat.shape[-1]
    L = w_mat.shape[-1]
    C = L + 2 * F + 1 + D

    # Host-side parameter fusion (tiny, one-off):
    #   wb_aug  = [[W | B | B], [bias | 0 | 0]]   (D+1, L+2F)
    #   pos_aug = [pos | 1]                       (N,   D+1)
    # so [latent | proj | proj] falls contiguously out of a single matmul.
    top = jnp.concatenate([w_mat, b_mat, b_mat], axis=-1).astype(jnp.float32)
    shift = jnp.concatenate([bias.reshape(-1).astype(jnp.float32),
                             jnp.zeros((2 * F,), jnp.float32)])[None, :]
    wb_aug = jnp.concatenate([top, shift], axis=0)                    # (D+1, L+2F)
    pos_aug = jnp.concatenate([pos.astype(jnp.float32),
                               jnp.ones((N, 1), jnp.float32)], axis=-1)  # (N, D+1)

    # Row tile: multiple of 8; cap so the grid keeps >= 2 steps when N allows
    # (lets the "parallel" axis shard across both TensorCores on v7x).
    tn = max(8, min(tile_n, _round_up(pl.cdiv(N, 2), 8)))
    grid = (pl.cdiv(N, tn),)   # ragged last block handled by Pallas (masked write)

    kernel = functools.partial(
        _input_processing_kernel,
        members=M, latent_dim=L, fourier_dim=F, pos_dim=D,
    )

    out_flat = pl.pallas_call(
        kernel,
        out_shape=jax.ShapeDtypeStruct((N, M * C), out_dtype),
        grid_spec=pltpu.PrefetchScalarGridSpec(
            num_scalar_prefetch=0,
            grid=grid,
            in_specs=[
                pl.BlockSpec((tn, D + 1), lambda i: (i, 0)),          # [pos | 1] tile
                pl.BlockSpec((tn, M), lambda i: (i, 0)),              # inputs tile
                pl.BlockSpec((D + 1, L + 2 * F), lambda i: (0, 0)),   # fused weights (resident)
            ],
            out_specs=pl.BlockSpec((tn, M * C), lambda i: (i, 0)),    # lane-dense flat output
        ),
        compiler_params=pltpu.CompilerParams(
            dimension_semantics=("parallel",),
            vmem_limit_bytes=64 * 1024 * 1024,
        ),
    )(pos_aug, inputs, wb_aug)

    # Free row-major reshape back to (N, M, C); no slice/copy needed.
    return out_flat.reshape(N, M, C)


def reference(inputs, pos, b_mat, w_mat, bias):
    """Plain-JAX reproduction of the PyTorch forward for verification."""
    N, M = inputs.shape
    proj = pos @ b_mat
    fourier = jnp.concatenate([jnp.sin(proj), jnp.cos(proj)], axis=-1)      # fourier_module(pos)
    latent = pos @ w_mat + bias[0]                                          # latent_feature_module(pos)
    positions = jnp.broadcast_to(pos[:, None, :], (N, M, pos.shape[-1]))    # pos.unsqueeze(1).repeat
    enc = jnp.broadcast_to(fourier[:, None, :], (N, M, fourier.shape[-1]))
    tr_enc = jnp.broadcast_to(latent[:, None, :], (N, M, latent.shape[-1]))
    inp = inputs[:, :, None]                                                # inputs.unsqueeze(-1)
    return jnp.concatenate([tr_enc, enc, inp, positions], axis=-1)


if __name__ == "__main__":
    # Small, module-consistent shapes.
    MEMBERS = 4     # ensemble members
    D = 3           # position dim
    F = 8           # fourier frequencies  -> 2*F encoded features
    L = 16          # latent / parametric encoding dim

    key = jax.random.PRNGKey(0)
    k_in, k_pos, k_b, k_w, k_bias = jax.random.split(key, 5)

    # Deterministic parameter init (synthetic, no checkpoint load).
    b_mat = 2.0 * jnp.pi * jax.random.normal(k_b, (D, F), dtype=jnp.float32)      # fourier freqs
    w_mat = jax.random.normal(k_w, (D, L), dtype=jnp.float32) * (1.0 / jnp.sqrt(D))
    bias = jax.random.normal(k_bias, (1, L), dtype=jnp.float32) * 0.01

    # Case 1: tiny N (small tiles, 2-step grid).
    N1 = 16
    inputs1 = jax.random.normal(k_in, (N1, MEMBERS), dtype=jnp.float32)
    pos1 = jax.random.uniform(k_pos, (N1, D), dtype=jnp.float32)
    out1 = jax.block_until_ready(input_processing(inputs1, pos1, b_mat, w_mat, bias))
    ref1 = reference(inputs1, pos1, b_mat, w_mat, bias)
    assert out1.shape == (N1, MEMBERS, L + 2 * F + 1 + D), out1.shape
    assert jnp.allclose(out1, ref1, atol=1e-5, rtol=1e-5), float(jnp.max(jnp.abs(out1 - ref1)))

    # Case 2: N not a multiple of the tile (ragged last block, multi-step grid).
    N2 = 200
    inputs2 = jax.random.normal(k_in, (N2, MEMBERS), dtype=jnp.float32)
    pos2 = jax.random.uniform(k_pos, (N2, D), dtype=jnp.float32)
    out2 = jax.block_until_ready(
        input_processing(inputs2, pos2, b_mat, w_mat, bias, tile_n=64))
    ref2 = reference(inputs2, pos2, b_mat, w_mat, bias)
    assert out2.shape == (N2, MEMBERS, L + 2 * F + 1 + D), out2.shape
    assert jnp.allclose(out2, ref2, atol=1e-5, rtol=1e-5), float(jnp.max(jnp.abs(out2 - ref2)))

    print("KERNEL_OK")
</pallas_src>

<mosaic_0001>
module attributes {stable_mosaic.version = 11 : i64} {
  func.func @_input_processing_kernel(%arg0: i32, %arg1: memref<8x4xf32, #tpu.memory_space<vmem>>, %arg2: memref<8x4xf32, #tpu.memory_space<vmem>>, %arg3: memref<4x32xf32, #tpu.memory_space<vmem>>, %arg4: memref<8x144xf32, #tpu.memory_space<vmem>>) attributes {dimension_semantics = [#tpu.dimension_semantics<parallel>], iteration_bounds = array<i64: 2>, scalar_prefetch = 0 : i64, scratch_operands = 0 : i64, tpu.core_type = #tpu.core_type<tc>, window_params = [{transform_indices = @transform_0, window_bounds = array<i64: 8, 4>}, {transform_indices = @transform_1, window_bounds = array<i64: 8, 4>}, {pipeline_mode = #tpu.pipeline_mode<synchronous>, transform_indices = @transform_2, window_bounds = array<i64: 4, 32>}, {transform_indices = @transform_3, window_bounds = array<i64: 8, 144>}]} {
    %c0 = arith.constant 0 : index
    %c0_0 = arith.constant 0 : index
    %0 = vector.load %arg1[%c0, %c0_0] : memref<8x4xf32, #tpu.memory_space<vmem>>, vector<8x4xf32>
    %c0_1 = arith.constant 0 : index
    %c0_2 = arith.constant 0 : index
    %1 = vector.load %arg2[%c0_1, %c0_2] : memref<8x4xf32, #tpu.memory_space<vmem>>, vector<8x4xf32>
    %c0_3 = arith.constant 0 : index
    %c0_4 = arith.constant 0 : index
    %2 = vector.load %arg3[%c0_3, %c0_4] : memref<4x32xf32, #tpu.memory_space<vmem>>, vector<4x32xf32>
    %cst = arith.constant dense<0.000000e+00> : vector<8x32xf32>
    %3 = tpu.matmul %0, %2, %cst {dimension_numbers = #tpu.dot_dimension_numbers<[1], [0], [0], [1], [0, 0, 1, 1], [], []>} : vector<8x4xf32>, vector<4x32xf32>, vector<8x32xf32> -> vector<8x32xf32>
    %4 = tpu.iota {dimensions = array<i32: 1>} : vector<8x32xi32>
    %c16_i32 = arith.constant 16 : i32
    %5 = vector.broadcast %c16_i32 : i32 to vector<8x32xi32>
    %6 = arith.cmpi slt, %4, %5 : vector<8x32xi32>
    %c24_i32 = arith.constant 24 : i32
    %7 = vector.broadcast %c24_i32 : i32 to vector<8x32xi32>
    %8 = arith.cmpi slt, %4, %7 : vector<8x32xi32>
    %9 = math.sin %3 : vector<8x32xf32>
    %10 = math.cos %3 : vector<8x32xf32>
    %11 = arith.select %8, %9, %10 : vector<8x32xi1>, vector<8x32xf32>
    %12 = arith.select %6, %3, %11 : vector<8x32xi1>, vector<8x32xf32>
    %13 = vector.extract_strided_slice %0 {offsets = [0, 0], sizes = [8, 3], strides = [1, 1]} : vector<8x4xf32> to vector<8x3xf32>
    %14 = vector.extract_strided_slice %1 {offsets = [0, 0], sizes = [8, 1], strides = [1, 1]} : vector<8x4xf32> to vector<8x1xf32>
    %15 = vector.extract_strided_slice %1 {offsets = [0, 1], sizes = [8, 1], strides = [1, 1]} : vector<8x4xf32> to vector<8x1xf32>
    %16 = vector.extract_strided_slice %1 {offsets = [0, 2], sizes = [8, 1], strides = [1, 1]} : vector<8x4xf32> to vector<8x1xf32>
    %17 = vector.extract_strided_slice %1 {offsets = [0, 3], sizes = [8, 1], strides = [1, 1]} : vector<8x4xf32> to vector<8x1xf32>
    %18 = tpu.concatenate %12, %14, %13, %12, %15, %13, %12, %16, %13, %12, %17, %13 in 1 : vector<8x32xf32>, vector<8x1xf32>, vector<8x3xf32>, vector<8x32xf32>, vector<8x1xf32>, vector<8x3xf32>, vector<8x32xf32>, vector<8x1xf32>, vector<8x3xf32>, vector<8x32xf32>, vector<8x1xf32>, vector<8x3xf32> -> vector<8x144xf32>
    %c0_5 = arith.constant 0 : index
    %c0_6 = arith.constant 0 : index
    %19 = vector.load %arg4[%c0_5, %c0_6] : memref<8x144xf32, #tpu.memory_space<vmem>>, vector<8x144xf32>
    tpu.vector_store %arg4[%c0_5, %c0_6], %18 {strides = array<i32>} : memref<8x144xf32, #tpu.memory_space<vmem>>, vector<8x144xf32>,
    return
  }
  func.func @transform_0(%arg0: i32) -> (i32, i32) {
    %c0_i32 = arith.constant 0 : i32
    %c0_i32_0 = arith.constant 0 : i32
    return %arg0, %c0_i32 : i32, i32
  }
  func.func @transform_1(%arg0: i32) -> (i32, i32) {
    %c0_i32 = arith.constant 0 : i32
    %c0_i32_0 = arith.constant 0 : i32
    return %arg0, %c0_i32 : i32, i32
  }
  func.func @transform_2(%arg0: i32) -> (i32, i32) {
    %c0_i32 = arith.constant 0 : i32
    %c0_i32_0 = arith.constant 0 : i32
    %c0_i32_1 = arith.constant 0 : i32
    return %c0_i32, %c0_i32_0 : i32, i32
  }
  func.func @transform_3(%arg0: i32) -> (i32, i32) {
    %c0_i32 = arith.constant 0 : i32
    %c0_i32_0 = arith.constant 0 : i32
    return %arg0, %c0_i32 : i32, i32
  }
}

</mosaic_0001>

<bundles_post_ra>
// kernel: input_processing.1
= control target key start
LH: loop header
LB: loop body
LE: loop exit
PB: predicated region body
PF: predicated region fallthrough
CT: control target
= control target key end

     0   :  { %8 = vsyncpa [#allocation3], 0  ;;  %s1310_s0 = inlined_call_operand.hbm [shape: f32[16,4], index: 0, kind: input, shape index: {}]   ;;  %s1311_s1 = inlined_call_operand.hbm [shape: f32[16,4], index: 1, kind: input, shape index: {}]   ;;  %s1312_s2 = inlined_call_operand.hbm [shape: f32[4,32], index: 2, kind: input, shape index: {}]   ;;  %s1313_s3 = inlined_call_operand.hbm [shape: f32[16,144], index: 3, kind: output, shape index: {}]  }
   0x1   :  { %10 = vsyncpa [#allocation3 + $0x1], 0 }
   0x2   :  { %11 = vsyncpa [#allocation6], 0 }
   0x3   :  { %13 = vsyncpa [#allocation6 + $0x1], 0 }
   0x4   :  { %14 = vsyncpa [#allocation4], 0 }
   0x5   :  { %16 = vsyncpa [#allocation4 + $0x1], 0  ;;  %s1038_s12 = smov 0   ;;  %s1040_s13 = smov 0  }
   0x6   :  { %s1042_s14 = smov 0   ;;  %s1044_s15 = smov 0  }
   0x7 LB: > { %s1059_s16 = sadd.s32 4294967295, %s993_s15   ;;  %s706_s17 = sadd.s32 4294967294, %s993_s15   ;;  %s993_s15 = sphi %s1044_s15, %s1339_s15   ;;  %s989_s14 = sphi %s1042_s14, %s1338_s14   ;;  %s985_s13 = sphi %s1040_s13, %s1337_s13   ;;  %s981_s12 = sphi %s1038_s12, %s1336_s12  }
   0x8   : > { %p42_p0 = scmp.ne.s32.totalorder %s985_s13, %s981_s12  ;;  %p1314_p1 = scmp.eq.s32.totalorder %s1059_s16, 0 }
   0x9   : > { %p119_p3 = scmp.eq.s32.totalorder %s706_s17, 1  ;;  %p707_p5 = scmp.ge.s32.totalorder %s993_s15, 1 }
   0xa   : > { %p1068_p4 = por %p1314_p1, %p42_p0  ;;  %p126_p7 = scmp.lt.s32.totalorder %s993_s15, 3 }
   0xb   : > { %p1073_p6 = por %p119_p3, %p42_p0  ;;  %s995_s21 = smov [#allocation7]  }
   0xc   : > { %s1318_s18 = scalar_select %p1068_p4, 1, 0 }
   0xd   : > { %s1319_s19 = scalar_select %p1073_p6, 1, 0 }
   0xe   : > { %p1078_p8 = pnand %p707_p5, %p126_p7  ;;  %s139_s22 = sshll.u32 %s995_s21, 4  ;;  %s140_s22 = int_to_ptr.vmem [resolvable:$true] %s139_s22 }
   0xf   : > { %s1086_s23 = sadd.s32 1, %s993_s15   ;;  %s29_s27 = sadd.s32 1, %s989_s14 }
  0x10   : > { %s1320_s20 = scalar_select %p1078_p8, 1, 0 }
  0x11   : > { %p756_p10 = pneg %p1078_p8  ;;  %s26_s25 = ssub.s32 %s993_s15, %s1086_s23 }
  0x12   : > { %p1096_p12 = scmp.eq.s32.totalorder %s26_s25, 0  ;;  %s831_s30 = scalar_lea.hbm %s1312_s2, 64 }
  0x13   : > { %p1090_p11 = pnand %p756_p10, %p1314_p1  ;;  %p832_p0 = scmp.ne.s32.totalorder %s1312_s2, %s831_s30 }
  0x14   : > { %s1322_s26 = scalar_select %p1096_p12, 1, 0 }
  0x15   : > { %p833_p3 = pneg %p1090_p11  ;;  %p838_p10 = scmp.lt.u32.totalorder %s831_s30, %s1312_s2 }
  0x17   : > { %p834_p5 = pnand %p833_p3, %p832_p0 }
  0x19   : > { %p835_p7 = pneg %p834_p5 }
  0x1b   : > { %p840_p9 = pnand %p838_p10, %p835_p7 }
  0x1d   : > { %843 = shalt.err (!%p840_p9)
}
  0x1e   : > { %s844_s8 = scalar_lea.vmem %s140_s22, 64  ;;  %p852_p6 = scmp.lt.s32.totalorder %s140_s22, %s140_s22 }
  0x1f   : > { %p845_p1 = scmp.ne.s32.totalorder %s140_s22, %s844_s8  ;;  %p853_p4 = scmp.lt.s32.totalorder %s844_s8, %s844_s8 }
  0x21   : > { %p847_p2 = pnand %p845_p1, %p833_p3  ;;  %p854_p8 = por %p853_p4, %p852_p6 }
  0x23   : > { %p848_p13 = pneg %p847_p2 }
  0x25   : > { %p855_p12 = pnand %p854_p8, %p848_p13 }
  0x27   : > { %858 = shalt.err (!%p855_p12)
}
  0x28   : > { %759 = dma.hbm_to_vmem [thread:$0]  (!%p1090_p11), %s1312_s2, 64, %s140_s22, [#allocation6]  }
  0x29   : > { %p1323_p1 = scmp.ne.s32.totalorder %s1322_s26, 0  ;;  %p37_p2 = scmp.eq.s32.totalorder %s993_s15, 0 }
  0x2a   : > { %p1324_p4 = scmp.ne.s32.totalorder %s989_s14, %s985_s13  ;;  %p1325_p6 = scmp.eq.s32.totalorder %s1059_s16, 1 }
  0x2b   : > { %s1122_s11 = scalar_select %p1323_p1, %s989_s14, %s29_s27  }
  0x2c   : > { %p1130_p8 = por %p1325_p6, %p1324_p4  ;;  %p772_p9 = scmp.lt.s32.totalorder %s993_s15, 2 }
  0x2d   : > { %s150_s21 = sand.u32 1, %s989_s14   ;;  %p1327_p12 = pmov %p1324_p4 }
  0x2e   : > { %s1326_s17 = scalar_select %p1130_p8, 1, 0 }
  0x2f   : > { %p38_p13 = por %p37_p2, %p1327_p12  ;;  %s1139_s24 = sshll.u32 %s150_s21, 3 }
  0x30   : > { %s711_s25 = sshll.u32 %s993_s15, 7  ;;  %s154_s27 = scalar_lea.vmem [#allocation2], %s1139_s24 }
  0x31   : > { %s1145_s26 = scalar_lea.hbm %s1310_s0, %s711_s25  ;;  %s161_s29 = sshll.u32 %s154_s27, 4  ;;  %s1152_s29 = int_to_ptr.vmem [resolvable:$true] %s161_s29 }
  0x32   : > { %p1148_p11 = pnand %p772_p9, %p38_p13  ;;  %s1157_s6 = scalar_lea.hbm %s1311_s1, %s711_s25 }
  0x33   : > { %s151_s7 = scalar_lea.sflag [#allocation3], %s150_s21  ;;  %s859_s8 = scalar_lea.hbm %s1145_s26, 128 }
  0x34   : > { %p860_p0 = scmp.ne.s32.totalorder %s1145_s26, %s859_s8  ;;  %p861_p3 = pneg %p1148_p11 }
  0x35   : > { %s864_s28 = scalar_lea.hbm %s1310_s0, 256  ;;  %p865_p10 = scmp.lt.u32.totalorder %s1145_s26, %s1310_s0 }
  0x36   : > { %p862_p5 = pnand %p861_p3, %p860_p0  ;;  %p866_p1 = scmp.lt.u32.totalorder %s864_s28, %s859_s8 }
  0x37   : > { %p868_p4 = scmp.lt.u32.totalorder %s859_s8, %s1145_s26 }
  0x38   : > { %p863_p7 = pneg %p862_p5  ;;  %p867_p2 = por %p866_p1, %p865_p10 }
  0x3a   : > { %p869_p6 = por %p868_p4, %p867_p2 }
  0x3c   : > { %p870_p9 = pnand %p869_p6, %p863_p7 }
  0x3e   : > { %873 = shalt.err (!%p870_p9)
}
  0x3f   : > { %s874_s21 = scalar_lea.vmem %s1152_s29, 128  ;;  %s996_s25 = smov [#allocation2]  }
  0x40   : > { %p875_p12 = scmp.ne.s32.totalorder %s1152_s29, %s874_s21  ;;  %s879_s4 = sshll.u32 %s996_s25, 4  ;;  %s880_s4 = int_to_ptr.vmem [resolvable:$false] %s879_s4 }
  0x41   : > { %s881_s5 = scalar_lea.vmem %s880_s4, 256  ;;  %p882_p5 = scmp.lt.s32.totalorder %s1152_s29, %s880_s4 }
  0x42   : > { %p877_p13 = pnand %p875_p12, %p861_p3  ;;  %p883_p10 = scmp.lt.s32.totalorder %s881_s5, %s874_s21 }
  0x44   : > { %p878_p0 = pneg %p877_p13  ;;  %p884_p1 = por %p883_p10, %p882_p5 }
  0x46   : > { %p885_p2 = pnand %p884_p1, %p878_p0 }
  0x48   : > { %888 = shalt.err (!%p885_p2)
}
  0x49   : > { %763 = dma.hbm_to_vmem [thread:$0]  (!%p1148_p11), %s1145_s26, 128, %s1152_s29, %s151_s7  }
  0x4a   : > { %s168_s8 = sand.u32 1, %s993_s15   ;;  %s172_s9 = scalar_lea.vmem [#allocation5], %s1139_s24 }
  0x4b   : > { %s179_s10 = sshll.u32 %s172_s9, 4  ;;  %s169_s28 = scalar_lea.sflag [#allocation6], %s168_s8  ;;  %s180_s10 = int_to_ptr.vmem [resolvable:$true] %s179_s10 }
  0x4c   : > { %s889_s22 = scalar_lea.hbm %s1157_s6, 128  ;;  %s894_s25 = scalar_lea.hbm %s1311_s1, 256 }
  0x4d   : > { %p890_p7 = scmp.ne.s32.totalorder %s1157_s6, %s889_s22  ;;  %p895_p9 = scmp.lt.u32.totalorder %s1157_s6, %s1311_s1 }
  0x4e   : > { %p896_p12 = scmp.lt.u32.totalorder %s894_s25, %s889_s22  ;;  %p898_p0 = scmp.lt.u32.totalorder %s889_s22, %s1157_s6 }
  0x4f   : > { %p892_p4 = pnand %p890_p7, %p861_p3 }
  0x50   : > { %p897_p13 = por %p896_p12, %p895_p9 }
  0x51   : > { %p893_p6 = pneg %p892_p4 }
  0x52   : > { %p899_p5 = por %p898_p0, %p897_p13 }
  0x54   : > { %p900_p10 = pnand %p899_p5, %p893_p6 }
  0x56   : > { %903 = shalt.err (!%p900_p10)
}
  0x57   : > { %s904_s24 = scalar_lea.vmem %s180_s10, 128  ;;  %s997_s26 = smov [#allocation5]  }
  0x58   : > { %p905_p1 = scmp.ne.s32.totalorder %s180_s10, %s904_s24  ;;  %s909_s29 = sshll.u32 %s997_s26, 4  ;;  %s910_s29 = int_to_ptr.vmem [resolvable:$false] %s909_s29 }
  0x59   : > { %s911_s7 = scalar_lea.vmem %s910_s29, 256  ;;  %p912_p4 = scmp.lt.s32.totalorder %s180_s10, %s910_s29 }
  0x5a   : > { %p907_p2 = pnand %p905_p1, %p861_p3  ;;  %p913_p8 = scmp.lt.s32.totalorder %s911_s7, %s904_s24 }
  0x5c   : > { %p908_p7 = pneg %p907_p2  ;;  %p914_p9 = por %p913_p8, %p912_p4 }
  0x5e   : > { %p915_p12 = pnand %p914_p9, %p908_p7 }
  0x60   : > { %918 = shalt.err (!%p915_p12)
}
  0x61   : > { %766 = dma.hbm_to_vmem [thread:$0]  (!%p1148_p11), %s1157_s6, 128, %s180_s10, %s169_s28  }
  0x62   : > { %p1329_p6 = scmp.ne.s32.totalorder %s1320_s20, 0 }
  0x63   : > { %s1208_s8 = sand.u32 (!%p1329_p6), 1, %s985_s13   ;;  %p1330_p3 = scmp.ne.s32.totalorder (!%p1329_p6), %s1318_s18, 0 }
  0x64   : > { %188 = sbr.rel (%p1329_p6) target bundleno = 549 (0x225), region = 32  ;;  %s715_s9 = sshll.u32 (!%p1329_p6), %s1208_s8, 3 }
  0x65   : > { %s191_s22 = scalar_lea.sflag (!%p1329_p6), [#allocation3], %s1208_s8  ;;  %s194_s27 = scalar_lea.vmem (!%p1329_p6), [#allocation2], %s715_s9 }
  0x6b   : > { %964 = dma.done.wait (%p1330_p3), %s191_s22, 128  }
  0x6c   : > { %966 = vsyncadd (%p1330_p3), %s191_s22, 4294967168  ;;  %s199_s30 = sand.u32 1, %s1059_s16   ;;  %s203_s20 = scalar_lea.vmem [#allocation5], %s715_s9 }
  0x6d   : > { %s200_s6 = scalar_lea.sflag [#allocation6], %s199_s30 }
  0x6e   : > { %968 = dma.done.wait (%p1330_p3), %s200_s6, 128  }
  0x6f   : > { %970 = vsyncadd (%p1330_p3), %s200_s6, 4294967168  ;;  %p1331_p8 = scmp.eq.s32.totalorder %s1059_s16, 0 }
  0x71   : > { %972 = dma.done.wait (%p1331_p8), [#allocation6], 64   ;;  %p1332_p11 = pmov %p1331_p8 }
  0x72   : > { %v998_v0 = vmov 0.0   ;;  %vm999_vm0 = vmmov 0   ;;  %vm242_vm1 = vcmask 1043456   ;;  %vm238_vm2 = vcmask 31744   ;;  %v237_v1 = vld [vmem:[#allocation7] sm:$0xf] }
  0x73   : > { %974 = vsyncadd (%p1332_p11), [#allocation6], 4294967232  ;;  %737 = vmatprep.subr.mxu0 %v998_v0  ;;  %739 = vmatprep.mubr.msk.f32.mxu0 %vm999_vm0, %v998_v0  ;;  %v1225_v2 = vld [vmem:[%s194_s27] sm:$0xff]  ;;  %v1227_v3 = vld [vmem:[%s203_s20] sm:$0xff]  ;;  %s1000_s18 = smov 32   ;;  %s1001_s10 = smov 33  }
  0x74   : > { %738 = vmatpush3.msk.msra.mxu0 %vm242_vm1, %v237_v1  ;;  %530 = vrot.lane.b32.xlu0 %v1227_v3, %s1000_s18  ;;  %s1002_s28 = smov 67   ;;  %s1003_s21 = smov 69   ;;  %v1006_v16 = vmov 683565275   ;;  %v1007_v18 = vmov 2475754826  }
  0x75   : > { %740 = vmatmul.mubr.msk.f32.vlgmr.msra.gmra.mrb[0].mxu0 %vm238_vm2, %v1225_v2  ;;  %540 = vrot.lane.b32.xlu1 %v1227_v3, %s1002_s28  ;;  %s1004_s25 = smov 105   ;;  %s1005_s4 = smov 102   ;;  %v1008_v21 = vmov 2131351028   ;;  %v1009_v24 = vmov 2102212464  }
  0x76   : > { %v1010_v27 = vmov 920167782   ;;  %v1011_v30 = vmov 1326507024   ;;  %s1012_s5 = smov 108   ;;  %s1013_s24 = smov 36  }
  0x77   : > { %s1014_s26 = smov 72   ;;  %s1015_s29 = smov 13  }
  0x78   : > { %533 = vrot.lane.b32.xlu0 %v1225_v2, %s1001_s10  ;;  %s1016_s7 = smov 9   ;;  %s718_s9 = sshll.u32 %s1208_s8, 4 }
  0x79   : > { %552 = vrot.lane.b32.xlu1 %v1225_v2, %s1004_s25  ;;  %s734_s22 = sshll.u32 %s1059_s16, 8  ;;  %s234_s27 = scalar_lea.vmem [#allocation8], %s718_s9 }
  0x7a   : > { %s604_s30 = sshll.u32 %s234_s27, 4  ;;  %s1266_s18 = scalar_lea.hbm %s1313_s3, %s734_s22  ;;  %s1268_s30 = int_to_ptr.vmem [resolvable:$true] %s604_s30 }
  0x7b   : > { %s590_s16 = scalar_lea.sflag [#allocation4], %s1208_s8  ;;  %s919_s10 = scalar_lea.vmem %s1268_s30, 256 }
  0x7c   : > { %543 = vrot.lane.b32.xlu0 %v1225_v2, %s1003_s21  ;;  %p920_p13 = scmp.ne.s32.totalorder %s1268_s30, %s919_s10  ;;  %p1333_p0 = scmp.ne.s32.totalorder %s1326_s17, 0 }
  0x7d   : > { %s1017_s28 = smov [#allocation8]  }
  0x7e   : > { %p921_p5 = pnand %p920_p13, %p1333_p0  ;;  %s923_s21 = sshll.u32 %s1017_s28, 4  ;;  %s924_s21 = int_to_ptr.vmem [resolvable:$false] %s923_s21 }
  0x7f   : > { %s925_s25 = scalar_lea.vmem %s924_s21, 512  ;;  %p926_p1 = scmp.lt.s32.totalorder %s1268_s30, %s924_s21 }
  0x80   : > { %549 = vrot.lane.b32.xlu0 %v1227_v3, %s1005_s4  ;;  %p922_p10 = pneg %p921_p5  ;;  %p927_p2 = scmp.lt.s32.totalorder %s925_s25, %s919_s10 }
  0x82   : > { %p928_p7 = por %p927_p2, %p926_p1 }
  0x84   : > { %p929_p4 = pnand %p928_p7, %p922_p10 }
 0x148   : > { %v1236_v4 = vpop.f32.mrb[0].mxu0 }
 0x149   : > { %v323_v5 = vand.u32 2139095040, %v1236_v4  ;;  %v741_v6 = vpop.f32.mrb[1].mxu0  ;;  %v320_v10 = vand.u32 2147483647, %v1236_v4  ;;  %vm322_vm10 = vcmp.lt.s32.totalorder %v1236_v4, 0 }
 0x14b   : > { %v324_v7 = vshrl.u32 %v323_v5, 23  ;;  %v327_v13 = vand.u32 8388607, %v320_v10  ;;  %vm321_vm11 = vcmp.le.f32.partialorder %v320_v10, 0.7853982 }
 0x14d   : > { %v721_v8 = vadd.s32 4294967169, %v324_v7  ;;  %v328_v32 = vor.u32 8388608, %v327_v13 }
 0x14f   : > { %v330_v9 = vadd.s32 1, %v721_v8  ;;  %v368_v46 = vshll.u32 %v328_v32, 8 }
 0x151   : > { %vm331_vm3 = vcmp.gt.s32.totalorder %v330_v9, 0 }
 0x152   : > { %v332_v11 = vsel %vm331_vm3, %v330_v9, 0 }
 0x153   : > { %v334_v12 = vand.u32 31, %v332_v11  ;;  %v333_v15 = vshrl.u32 %v332_v11, 5 }
 0x155   : > { %v335_v14 = vsub.s32 32, %v334_v12  ;;  %v337_v17 = vshll.u32 %v1006_v16, %v334_v12  ;;  %v340_v19 = vshll.u32 %v1007_v18, %v334_v12  ;;  %v343_v23 = vshll.u32 %v1008_v21, %v334_v12 }
 0x156   : > { %v346_v26 = vshll.u32 %v1009_v24, %v334_v12  ;;  %v349_v29 = vshll.u32 %v1010_v27, %v334_v12  ;;  %vm352_vm4 = vcmp.lt.s32.totalorder %v333_v15, 1  ;;  %vm355_vm5 = vcmp.lt.s32.totalorder %v333_v15, 4 }
 0x157   : > { %v338_v20 = vshrl.u32 %v1007_v18, %v335_v14  ;;  %v341_v22 = vshrl.u32 %v1008_v21, %v335_v14  ;;  %v344_v25 = vshrl.u32 %v1009_v24, %v335_v14  ;;  %v347_v28 = vshrl.u32 %v1010_v27, %v335_v14 }
 0x158   : > { %v350_v31 = vshrl.u32 %v1011_v30, %v335_v14  ;;  %v336_v41 = vshrl.u32 %v1006_v16, %v335_v14  ;;  %vm354_vm6 = vcmp.lt.s32.totalorder %v333_v15, 3  ;;  %vm353_vm7 = vcmp.lt.s32.totalorder %v333_v15, 2 }
 0x159   : > { %v339_v33 = vor.u32 %v338_v20, %v337_v17  ;;  %v342_v34 = vor.u32 %v341_v22, %v340_v19  ;;  %v345_v35 = vor.u32 %v344_v25, %v343_v23  ;;  %v348_v36 = vor.u32 %v347_v28, %v346_v26 }
 0x15a   : > { %v351_v37 = vor.u32 %v350_v31, %v349_v29  ;;  %v316_v28 = vlaneseq }
 0x15b   : > { %v357_v38 = vsel %vm355_vm5, %v345_v35, 2102212464  ;;  %v360_v39 = vsel %vm352_vm4, %v339_v33, %v342_v34  ;;  %v364_v40 = vsel %vm352_vm4, %v342_v34, %v345_v35  ;;  %v361_v42 = vsel %vm355_vm5, %v348_v36, 920167782 }
 0x15c   : > { %v365_v43 = vsel %vm355_vm5, %v351_v37, 1326507024  ;;  %v362_v44 = vsel %vm354_vm6, %v345_v35, %v361_v42  ;;  %v356_v47 = vsel %vm352_vm4, %v336_v41, %v339_v33  ;;  %v358_v48 = vsel %vm354_vm6, %v342_v34, %v357_v38 }
 0x15d   : > { %v366_v45 = vsel %vm354_vm6, %v348_v36, %v365_v43  ;;  %v363_v49 = vsel %vm353_vm7, %v360_v39, %v362_v44  ;;  %v359_v55 = vsel %vm353_vm7, %v356_v47, %v358_v48  ;;  %v317_v31 = vand.u32 127, %v316_v28  ;;  %v541_v47 = vpop.permute.xlu1 %540 }
 0x15e   : > { %v367_v50 = vsel %vm353_vm7, %v364_v40, %v366_v45  ;;  %v1245_v53 = vmul.u32.u64.low %v368_v46, %v363_v49  ;;  %v1246_v54 = vmul.u32.u64.high %v368_v46, %v363_v49, %v1245_v53  ;;  %v375_v57 = vmul.u32 %v368_v46, %v359_v55  ;;  %v531_v45 = vpop.permute.xlu0 %530 }
 0x15f   : > { %v1242_v51 = vmul.u32.u64.low %v368_v46, %v367_v50  ;;  %v1243_v52 = vmul.u32.u64.high %v368_v46, %v367_v50, %v1242_v51  ;;  %vm319_vm12 = vcmp.lt.s32.totalorder %v317_v31, 24  ;;  %vm318_vm3 = vcmp.lt.s32.totalorder %v317_v31, 16 }
 0x160   : > { %v378_v56 = vadd.s32 1, %v1246_v54  ;;  %vm412_vm4 = vweird.f32 %v1236_v4  ;;  %vm564_vm5 = vcmask 261120   ;;  %vm566_vm6 = vcmask 269312  }
 0x161   : > { %vm377_vm8 = vc.u32 %v1243_v52, %v1245_v53  ;;  %v376_v8 = vadd.s32 %v1245_v53, %v1243_v52  ;;  %v553_v49 = vpop.permute.xlu1 %552  ;;  %vm568_vm7 = vcmask 293888  }
 0x162   : > { %v379_v58 = vsel %vm377_vm8, %v378_v56, %v1246_v54  ;;  %v534_v46 = vpop.permute.xlu0 %533  ;;  %vm570_vm8 = vcmask 556032  }
 0x163   : > { %v380_v59 = vadd.s32 %v379_v58, %v375_v57 }
 0x165   : > { %v381_v60 = vadd.s32 536870912, %v380_v59 }
 0x166   : > { %v544_v48 = vpop.permute.xlu0 %543 }
 0x167   : > { %v382_v61 = vshrl.u32 %v381_v60, 30 }
 0x169   : > { %v383_v62 = vshll.u32 %v382_v61, 30  ;;  %v406_v21 = vsub.s32 4, %v382_v61 }
 0x16a   : > { %v550_v50 = vpop.permute.xlu0 %549 }
 0x16b   : > { %v384_v63 = vsub.s32 %v380_v59, %v383_v62  ;;  %v407_v24 = vsel %vm322_vm10, %v406_v21, %v382_v61 }
 0x16c   : > { %v409_v26 = vsel %vm321_vm11, 0, %v407_v24 }
 0x16d   : > { %v386_v0 = vsub.s32 0, %v384_v63  ;;  %v413_v27 = vadd.s32 3, %v409_v26  ;;  %v517_v30 = vand.u32 3, %v409_v26 }
 0x16f   : > { %v722_v1 = vmin.u32 %v386_v0, %v384_v63  ;;  %v414_v29 = vand.u32 3, %v413_v27  ;;  %vm522_vm14 = vcmp.eq.s32.totalorder %v517_v30, 2  ;;  %vm519_vm0 = vcmp.eq.s32.totalorder %v517_v30, 0 }
 0x170   : > { %vm518_vm2 = vcmp.lt.s32.totalorder %v517_v30, 2 }
 0x171   : > { %v388_v5 = vclz %v722_v1  ;;  %vm419_vm13 = vcmp.eq.s32.totalorder %v414_v29, 2  ;;  %vm416_vm15 = vcmp.eq.s32.totalorder %v414_v29, 0  ;;  %vm415_vm1 = vcmp.lt.s32.totalorder %v414_v29, 2 }
 0x173   : > { %v723_v6 = vadd.s32 4294967294, %v388_v5 }
 0x175   : > { %vm724_vm9 = vcmp.lt.s32.totalorder %v723_v6, 0 }
 0x176   : > { %v391_v7 = vsel %vm724_vm9, 0, %v723_v6  ;;  %vm572_vm9 = vcmask 564224  }
 0x177   : > { %v392_v9 = vsub.s32 32, %v391_v7  ;;  %v396_v11 = vsub.s32 4294967266, %v391_v7  ;;  %v393_v12 = vshll.u32 %v384_v63, %v391_v7 }
 0x179   : > { %v394_v13 = vshrl.u32 %v376_v8, %v392_v9  ;;  %v397_v14 = vadd.s32 127, %v396_v11 }
 0x17b   : > { %v395_v15 = vor.u32 %v394_v13, %v393_v12  ;;  %v398_v16 = vshll.u32 %v397_v14, 23 }
 0x17d   : > { %v399_v17 = vor.u32 4788187, %v398_v16  ;;  %v402_v19 = vcvt.s32.f32 %v395_v15 }
 0x17f   : > { %v400_v18 = vand.u32 2147483647, %v399_v17 }
 0x181   : > { %v403_v20 = vmul.f32 %v402_v19, %v400_v18 }
 0x183   : > { %v404_v22 = vxor.u32 2147483648, %v403_v20 }
 0x185   : > { %v405_v23 = vsel %vm322_vm10, %v404_v22, %v403_v20  ;;  %vm574_vm10 = vcmask 588800  }
 0x186   : > { %v408_v25 = vsel %vm321_vm11, %v1236_v4, %v405_v23  ;;  %vm576_vm11 = vcmask 850944  }
 0x187   : > { %827 = vcosq.f32 %v408_v25 }
 0x188   : > { %829 = vsinq.f32 %v408_v25 }
 0x191   : > { %v828_v32 = vpop.eup %827 }
 0x192   : > { %v830_v33 = vpop.eup %829  ;;  %v420_v34 = vxor.u32 2147483648, %v828_v32 }
 0x193   : > { %v417_v35 = vxor.u32 2147483648, %v830_v33 }
 0x194   : > { %v421_v10 = vsel %vm419_vm13, %v420_v34, %v830_v33  ;;  %v524_v36 = vsel %vm522_vm14, %v420_v34, %v830_v33  ;;  %vm580_vm13 = vcmask 883712   ;;  %vm582_vm14 = vcmask 97280  }
 0x195   : > { %v418_v37 = vsel %vm416_vm15, %v828_v32, %v417_v35  ;;  %v521_v38 = vsel %vm519_vm0, %v828_v32, %v417_v35  ;;  %vm584_vm15 = vcmask 105472   ;;  %vm587_vm0 = vcmask 130048  }
 0x196   : > { %v422_v39 = vsel %vm415_vm1, %v418_v37, %v421_v10  ;;  %v525_v40 = vsel %vm518_vm2, %v521_v38, %v524_v36 }
 0x197   : > { %v423_v41 = vsel %vm412_vm4, nan, %v422_v39  ;;  %v526_v42 = vsel %vm412_vm4, nan, %v525_v40 }
 0x198   : > { %v527_v43 = vsel %vm319_vm12, %v423_v41, %v526_v42  ;;  %vm578_vm12 = vcmask 859136  }
 0x199   : > { %v528_v44 = vsel %vm318_vm3, %v1236_v4, %v527_v43 }
 0x19a   : > { %555 = vrot.lane.b32.xlu0 %v528_v44, %s1012_s5  ;;  %537 = vrot.lane.b32.xlu1 %v528_v44, %s1013_s24  ;;  %v565_v4 = vsel %vm564_vm5, %v528_v44, %v531_v45 }
 0x19b   : > { %v567_v51 = vsel %vm566_vm6, %v565_v4, %v534_v46 }
 0x19e   : > { %546 = vrot.lane.b32.xlu1 %v528_v44, %s1014_s26  ;;  %561 = vrot.lane.b32.xlu0 %v1225_v2, %s1015_s29 }
 0x1a2   : > { %558 = vrot.lane.b32.xlu1 %v1227_v3, %s1016_s7 }
 0x20c   : > { %v538_v52 = vpop.permute.xlu1 %537  ;;  %v556_v3 = vpop.permute.xlu0 %555 }
 0x20d   : > { %v569_v2 = vsel %vm568_vm7, %v567_v51, %v538_v52 }
 0x20e   : > { %v571_v53 = vsel %vm570_vm8, %v569_v2, %v541_v47 }
 0x20f   : > { %v573_v54 = vsel %vm572_vm9, %v571_v53, %v544_v48 }
 0x210   : > { %v547_v55 = vpop.permute.xlu1 %546  ;;  %v562_v59 = vpop.permute.xlu0 %561 }
 0x211   : > { %v575_v56 = vsel %vm574_vm10, %v573_v54, %v547_v55 }
 0x212   : > { %v577_v57 = vsel %vm576_vm11, %v575_v56, %v550_v50 }
 0x213   : > { %v579_v58 = vsel %vm578_vm12, %v577_v57, %v553_v49 }
 0x214   : > { %v581_v60 = vsel %vm580_vm13, %v579_v58, %v556_v3  ;;  %v559_v61 = vpop.permute.xlu1 %558 }
 0x215   : > { %v583_v62 = vsel %vm582_vm14, %v556_v3, %v559_v61  ;;  %586 = vst [vmem:[%s234_s27] sm:$0xff] %v581_v60 }
 0x216   : > { %v585_v63 = vsel %vm584_vm15, %v583_v62, %v562_v59 }
 0x217   : > { %588 = vst.msk [vmem:[%s234_s27 + $0x8] sm:$0xff] %vm587_vm0, %v585_v63 }
 0x218   : > { %932 = shalt.err (!%p929_p4)
}
 0x219   : > { %s933_s8 = scalar_lea.hbm %s1266_s18, 256  ;;  %s937_s24 = scalar_lea.hbm %s1313_s3, 512 }
 0x21a   : > { %p934_p9 = scmp.ne.s32.totalorder %s1266_s18, %s933_s8  ;;  %p938_p3 = scmp.lt.u32.totalorder %s1266_s18, %s1313_s3 }
 0x21b   : > { %p939_p8 = scmp.lt.u32.totalorder %s937_s24, %s933_s8  ;;  %p941_p13 = scmp.lt.u32.totalorder %s933_s8, %s1266_s18 }
 0x21c   : > { %p935_p12 = pnand %p934_p9, %p1333_p0 }
 0x21d   : > { %p940_p11 = por %p939_p8, %p938_p3 }
 0x21e   : > { %p936_p6 = pneg %p935_p12 }
 0x21f   : > { %p942_p5 = por %p941_p13, %p940_p11 }
 0x221   : > { %p943_p10 = pnand %p942_p5, %p936_p6 }
 0x223   : > { %946 = shalt.err (!%p943_p10)
}
 0x224   : > { %754 = dma.vmem_to_hbm [thread:$0]  (%p1333_p0), %s1268_s30, 256, %s1266_s18, %s590_s16  }
 0x225 PF: > { %s616_s7 = sand.u32 1, %s981_s12   ;;  %p1334_p1 = scmp.ne.s32.totalorder %s1319_s19, 0 }
 0x226   : > { %p1335_p2 = scmp.ge.s32.totalorder %s993_s15, 2  ;;  %s617_s9 = scalar_lea.sflag [#allocation4], %s616_s7 }
 0x228   : > { %p768_p7 = pnand %p1335_p2, %p1334_p1 }
 0x22a   : > { %976 = dma.done.wait (!%p768_p7), %s617_s9, 256  }
 0x22b   : > { %978 = vsyncadd (!%p768_p7), %s617_s9, 4294967040  ;;  %p19_p4 = scmp.ge.s32.totalorder %s1086_s23, 4   ;;  %s1336_s12 = smov %s985_s13 }
 0x22c   : > { %s1337_s13 = smov %s989_s14  ;;  %s1338_s14 = smov %s1122_s11 }
 0x22d   : > { %s1339_s15 = smov %s1086_s23  ;;  %21 = sbr.rel (!%p19_p4) target bundleno = 7 (0x7), region = 94 }
 0x234   :  { %622 = vsyncpa [#allocation3], 1 }
 0x235   :  { %624 = vsyncpa [#allocation3 + $0x1], 1 }
 0x236   :  { %625 = vsyncpa [#allocation6], 1 }
 0x237   :  { %627 = vsyncpa [#allocation6 + $0x1], 1 }
 0x238   :  { %628 = vsyncpa [#allocation4], 1 }
 0x239   :  { %630 = vsyncpa [#allocation4 + $0x1], 1 }

</bundles_post_ra>
